<compile_context>
chip_gen: v6e
topology: v6e:2x2x1
jax: 0.10.0
libtpu: 0.0.40
codegen_flags: <defaults>
</compile_context>

<pallas_src>
import functools
from typing import NamedTuple, Optional

import jax
import jax.numpy as jnp
from jax.experimental import pallas as pl
from jax.experimental.pallas import tpu as pltpu


def _round_up(x: int, m: int) -> int:
    return ((x + m - 1) // m) * m


def _vmem_capacity_bytes() -> int:
    """Physical VMEM per TensorCore (128 MiB on v5e/v6e, 64 MiB on v7x)."""
    try:
        cap = int(pltpu.get_tpu_info().vmem_capacity_bytes)
        if cap > 0:
            return cap
    except Exception:
        pass
    try:
        kind = jax.devices()[0].device_kind.lower()
    except Exception:
        return 64 << 20
    if "v7" in kind:
        return 64 << 20
    return 128 << 20


def _mxu_lane_align() -> int:
    """d_ff tile alignment: 128 on v5e (4x128x128 MXU), 256 on v6e/v7x (2x256x256 MXU)."""
    try:
        kind = jax.devices()[0].device_kind.lower()
    except Exception:
        return 128
    if "v5 lite" in kind or "v5e" in kind or "v5litepod" in kind:
        return 128
    return 256


class FFNParams(NamedTuple):
    w1t: jax.Array   # [dmp, dfp]  (= W1.T, zero-padded, compute dtype)
    b1: jax.Array    # [1, dfp]    (f32)
    w2t: jax.Array   # [dfp, dmp]  (= W2.T, zero-padded, compute dtype)
    b2: jax.Array    # [1, dmp]    (f32)
    d_model: int
    d_ff: int
    dmp: int         # padded d_model (multiple of 128)
    dfp: int         # padded d_ff    (= nf * tf)
    tf: int          # d_ff tile
    nf: int          # number of d_ff tiles (1 => weights VMEM-resident, DMA'd once)
    compute_dtype: jnp.dtype


def prepare_ffn_params(w1, b1, w2, b2, *, compute_dtype=jnp.bfloat16,
                       weight_vmem_budget_bytes: Optional[int] = None):
    """Transpose / pad / cast the FFN weights once (hoisted out of the per-call path).

    w1: [d_ff, d_model], b1: [d_ff], w2: [d_model, d_ff], b2: [d_model]  (nn.Linear convention).

    weight_vmem_budget_bytes bounds the (double-buffered) W1^T/W2^T VMEM allocation.  The
    default is generation-aware (~60% of physical VMEM): ~77 MiB on v5e/v6e (128 MiB VMEM),
    ~38 MiB on v7x (64 MiB).  If the whole weight matrices fit, nf=1 and the weights are
    streamed from HBM exactly once for the entire kernel.
    """
    d_ff, d_model = w1.shape
    assert w2.shape == (d_model, d_ff)
    assert b1.shape == (d_ff,) and b2.shape == (d_model,)

    cap = _vmem_capacity_bytes()
    if weight_vmem_budget_bytes is None:
        weight_vmem_budget_bytes = max(8 << 20, int(0.60 * cap))

    align = _mxu_lane_align()
    dmp = _round_up(d_model, 128)
    dffp = _round_up(d_ff, align)
    c = jnp.dtype(compute_dtype).itemsize

    # Resident case: both weights, counted with the default 2x pipeline buffers.
    # TODO(synk): pipeline_mode=pl.Buffered(1) on the weight specs would halve this (the
    #             second buffer is never used when the index map is constant); omitted to
    #             stay conservative on lowering support.
    resident_bytes = 2 * 2 * dmp * dffp * c
    if resident_bytes <= weight_vmem_budget_bytes:
        nf, tf = 1, dffp
    else:
        # Streaming case: keep per-step weight tiles small (<= ~30% of VMEM) so the token
        # tile tm can stay large -- total weight HBM traffic is (Mp/tm)*|W| regardless of tf.
        stream_budget = min(weight_vmem_budget_bytes, int(0.30 * cap))
        bytes_per_f_col = 2 * 2 * dmp * c          # both weights x 2 pipeline buffers
        tf_cap = max(align, (stream_budget // bytes_per_f_col) // align * align)
        nf = -(-dffp // tf_cap)                    # ceil-div
        tf = _round_up(-(-dffp // nf), align)      # even split, MXU-aligned
    dfp = nf * tf

    w1t = jnp.pad(w1.T, ((0, dmp - d_model), (0, dfp - d_ff))).astype(compute_dtype)
    w2t = jnp.pad(w2.T, ((0, dfp - d_ff), (0, dmp - d_model))).astype(compute_dtype)
    b1p = jnp.pad(b1, (0, dfp - d_ff)).astype(jnp.float32).reshape(1, dfp)
    b2p = jnp.pad(b2, (0, dmp - d_model)).astype(jnp.float32).reshape(1, dmp)

    return FFNParams(w1t, b1p, w2t, b2p, d_model, d_ff, dmp, dfp, tf, nf,
                     jnp.dtype(compute_dtype))


def _ffn_kernel_single(x_ref, w1t_ref, b1_ref, w2t_ref, b2_ref, o_ref, *, residual: bool):
    """nf == 1: whole (padded) d_ff in one pass; no accumulator needed.

    x_ref:   [tm, dmp]  original dtype (residual path stays full precision)
    w1t_ref: [dmp, dfp] compute dtype;  w2t_ref: [dfp, dmp] compute dtype
    b1_ref:  [1, dfp] f32;  b2_ref: [1, dmp] f32;  o_ref: [tm, dmp]
    """
    xc = x_ref[...].astype(w1t_ref.dtype)
    h = jnp.dot(xc, w1t_ref[...], preferred_element_type=jnp.float32)
    h = jnp.maximum(h + b1_ref[...], 0.0)
    # dropout -> identity in eval mode.
    # TODO(synk): training-mode dropout would mask h via pltpu.prng_seed / prng_random_bits.
    y = jnp.dot(h.astype(w2t_ref.dtype), w2t_ref[...], preferred_element_type=jnp.float32)
    y = y + b2_ref[...]
    if residual:                              # EncoderLayer sublayer: x + ffn(x), exact x
        y = y + x_ref[...].astype(jnp.float32)
    o_ref[...] = y.astype(o_ref.dtype)


def _ffn_kernel_multi(x_ref, w1t_ref, b1_ref, w2t_ref, b2_ref, o_ref, *maybe_acc,
                      residual: bool):
    """nf > 1: d_ff tiled on the innermost ('arbitrary') grid axis.

    If the output dtype is f32 the VMEM-resident output block is the accumulator
    (maybe_acc empty); otherwise maybe_acc = (f32 scratch accumulator,).
    """
    acc_ref = maybe_acc[0] if maybe_acc else o_ref
    f = pl.program_id(1)

    @pl.when(f == 0)
    def _init():
        acc_ref[...] = jnp.zeros_like(acc_ref)

    xc = x_ref[...].astype(w1t_ref.dtype)
    h = jnp.dot(xc, w1t_ref[...], preferred_element_type=jnp.float32)
    h = jnp.maximum(h + b1_ref[...], 0.0)
    acc_ref[...] += jnp.dot(h.astype(w2t_ref.dtype), w2t_ref[...],
                            preferred_element_type=jnp.float32)

    @pl.when(f == pl.num_programs(1) - 1)
    def _finalize():
        y = acc_ref[...] + b2_ref[...]
        if residual:
            y = y + x_ref[...].astype(jnp.float32)
        o_ref[...] = y.astype(o_ref.dtype)


def ffn_forward(x, params: FFNParams, *, residual: bool = False, tm: int = 512):
    """x: [B, S, d_model] -> [B, S, d_model].  residual=True computes x + ffn(x)."""
    B, S, d_model = x.shape
    assert d_model == params.d_model
    M = B * S
    dmp, dfp, tf, nf = params.dmp, params.dfp, params.tf, params.nf

    x_item = jnp.dtype(x.dtype).itemsize
    out_dtype = x.dtype
    out_item = jnp.dtype(out_dtype).itemsize
    c_item = jnp.dtype(params.compute_dtype).itemsize
    use_scratch_acc = (nf > 1) and (jnp.dtype(out_dtype) != jnp.float32)

    cap = _vmem_capacity_bytes()
    usable = int(0.75 * cap)        # ~96 MiB on v5e/v6e, ~48 MiB on v7x (never > physical)

    def vmem_est(tm_):
        return (2 * tm_ * dmp * x_item            # x tiles (double-buffered)
                + 2 * 2 * dmp * tf * c_item       # W1^T / W2^T tiles (double-buffered)
                + 2 * (tf + dmp) * 4              # biases
                + 2 * tm_ * dmp * out_item        # output tiles (double-buffered)
                + (tm_ * dmp * 4 if use_scratch_acc else 0)
                + tm_ * tf * (4 + c_item)         # h intermediate (f32 + compute-dtype copy)
                + tm_ * dmp * c_item)             # in-kernel x cast temp

    # Token tile: as large as the VMEM budget allows (>=128, multiple of 128).
    tm = max(128, min(_round_up(tm, 128), _round_up(M, 128)))
    while tm > 128 and vmem_est(tm) > usable:
        tm = max(128, (tm // 2) // 128 * 128)
    Mp = _round_up(M, tm)
    est = vmem_est(tm)
    vmem_limit = int(min(max(int(est * 1.25) + (4 << 20), 32 << 20), usable))

    # Keep x in its ORIGINAL dtype: matmul operand is cast to the compute dtype in-kernel,
    # the residual uses full-precision x.  Zero-pad to lane/sublane-aligned, ragged-M-safe.
    x2d = x.reshape(M, d_model)
    if (Mp, dmp) != (M, d_model):
        x2d = jnp.pad(x2d, ((0, Mp - M), (0, dmp - d_model)))

    weight_passes = 1 if nf == 1 else (Mp // tm)    # weights re-streamed per token tile iff nf>1
    cost = pl.CostEstimate(
        flops=int(4 * Mp * dmp * dfp),              # two matmuls: 2*M*dm*df each
        transcendentals=0,
        bytes_accessed=int(Mp * dmp * (x_item + out_item)
                           + weight_passes * 2 * dmp * dfp * c_item
                           + (dfp + dmp) * 4),
    )

    if nf == 1:
        # Resident-weights fast path: constant weight/bias index_maps -> DMA'd exactly once.
        grid = (Mp // tm,)
        kernel = functools.partial(_ffn_kernel_single, residual=residual)
        in_specs = [
            pl.BlockSpec((tm, dmp), lambda i: (i, 0)),     # x tile
            pl.BlockSpec((dmp, dfp), lambda i: (0, 0)),    # W1^T (resident)
            pl.BlockSpec((1, dfp), lambda i: (0, 0)),      # b1
            pl.BlockSpec((dfp, dmp), lambda i: (0, 0)),    # W2^T (resident)
            pl.BlockSpec((1, dmp), lambda i: (0, 0)),      # b2
        ]
        out_spec = pl.BlockSpec((tm, dmp), lambda i: (i, 0))
        scratch = []
        # TODO(synk): on v7x (2 TCs) confirm "parallel" shards the token axis across cores;
        #             otherwise switch this axis to pltpu.CORE_PARALLEL.
        dim_sem = ("parallel",)
    else:
        grid = (Mp // tm, nf)                              # (tokens, d_ff tiles), reduction last
        kernel = functools.partial(_ffn_kernel_multi, residual=residual)
        in_specs = [
            pl.BlockSpec((tm, dmp), lambda i, f: (i, 0)),  # x tile (constant over f)
            pl.BlockSpec((dmp, tf), lambda i, f: (0, f)),  # W1^T tile
            pl.BlockSpec((1, tf), lambda i, f: (0, f)),    # b1 tile
            pl.BlockSpec((tf, dmp), lambda i, f: (f, 0)),  # W2^T tile
            pl.BlockSpec((1, dmp), lambda i, f: (0, 0)),   # b2
        ]
        out_spec = pl.BlockSpec((tm, dmp), lambda i, f: (i, 0))
        # f32 output accumulates directly in the resident output block; bf16 output needs
        # an f32 scratch accumulator.
        scratch = [pltpu.VMEM((tm, dmp), jnp.float32)] if use_scratch_acc else []
        dim_sem = ("parallel", "arbitrary")

    out2d = pl.pallas_call(
        kernel,
        out_shape=jax.ShapeDtypeStruct((Mp, dmp), out_dtype),
        grid_spec=pltpu.PrefetchScalarGridSpec(
            num_scalar_prefetch=0,
            grid=grid,
            in_specs=in_specs,
            out_specs=out_spec,
            scratch_shapes=scratch,
        ),
        compiler_params=pltpu.CompilerParams(
            dimension_semantics=dim_sem,
            vmem_limit_bytes=vmem_limit,
        ),
        cost_estimate=cost,
    )(x2d, params.w1t, params.b1, params.w2t, params.b2)

    return out2d[:M, :d_model].reshape(B, S, d_model)


def positionwise_feed_forward(x, w1, b1, w2, b2, *, compute_dtype=jnp.bfloat16, tm=512):
    """One-shot helper: ffn(x) = W2 @ relu(W1 @ x + b1) + b2 (no residual).
    In production, call prepare_ffn_params once and reuse it across calls."""
    params = prepare_ffn_params(w1, b1, w2, b2, compute_dtype=compute_dtype)
    return ffn_forward(x, params, residual=False, tm=tm)


def encoder_ffn_sublayer(x, params: FFNParams, *, tm=512):
    """EncoderLayer's second sublayer: x + feed_forward(x).
    (This 'res' SublayerConnection applies neither LayerNorm nor dropout in forward.)"""
    return ffn_forward(x, params, residual=True, tm=tm)


def _init_params(key, d_model, d_ff, dtype=jnp.float32):
    """Deterministic init mimicking nn.Linear's uniform(-1/sqrt(fan_in), 1/sqrt(fan_in))."""
    k1, k2, k3, k4 = jax.random.split(key, 4)
    bound1 = 1.0 / (d_model ** 0.5)
    bound2 = 1.0 / (d_ff ** 0.5)
    w1 = jax.random.uniform(k1, (d_ff, d_model), dtype, -bound1, bound1)
    b1 = jax.random.uniform(k2, (d_ff,), dtype, -bound1, bound1)
    w2 = jax.random.uniform(k3, (d_model, d_ff), dtype, -bound2, bound2)
    b2 = jax.random.uniform(k4, (d_model,), dtype, -bound2, bound2)
    return w1, b1, w2, b2


def _ffn_reference(x, w1, b1, w2, b2):
    return jnp.maximum(x @ w1.T + b1, 0.0) @ w2.T + b2


if __name__ == "__main__":
    key = jax.random.PRNGKey(0)
    kx, kp, kx2, kp2 = jax.random.split(key, 4)

    batch, seq, d_model, d_ff = 2, 8, 32, 64
    x = jax.random.normal(kx, (batch, seq, d_model), jnp.float32)
    w1, b1, w2, b2 = _init_params(kp, d_model, d_ff)

    ffn_ref = _ffn_reference(x, w1, b1, w2, b2)
    ref = x + ffn_ref

    # 1) f32 compute, resident weights (nf=1): tight check of padding + residual + epilogue.
    p32 = prepare_ffn_params(w1, b1, w2, b2, compute_dtype=jnp.float32)
    y32 = jax.block_until_ready(encoder_ffn_sublayer(x, p32))
    assert y32.shape == (batch, seq, d_model)
    assert jnp.allclose(y32, ref, atol=1e-5, rtol=1e-5), "f32 resident path mismatch"

    # 2) bf16 compute (performance configuration); residual stays full-precision f32.
    pbf = prepare_ffn_params(w1, b1, w2, b2, compute_dtype=jnp.bfloat16)
    ybf = jax.block_until_ready(encoder_ffn_sublayer(x, pbf))
    assert ybf.shape == (batch, seq, d_model)
    assert jnp.allclose(ybf, ref, atol=2e-2, rtol=2e-2), "bf16 resident path mismatch"

    # 3) Plain FFN (no residual), f32, matches PositionwiseFeedForward exactly.
    yffn = jax.block_until_ready(
        positionwise_feed_forward(x, w1, b1, w2, b2, compute_dtype=jnp.float32))
    assert jnp.allclose(yffn, ffn_ref, atol=1e-5, rtol=1e-5), "ffn mismatch vs reference"

    # 4) Force the streaming (nf>1) path with a tiny weight budget: f32 output accumulates
    #    directly in the resident output block (no scratch accumulator).
    dm2, df2 = 48, 640
    x2 = jax.random.normal(kx2, (batch, seq, dm2), jnp.float32)
    w1b, b1b, w2b, b2b = _init_params(kp2, dm2, df2)
    ref2 = x2 + _ffn_reference(x2, w1b, b1b, w2b, b2b)
    p_stream = prepare_ffn_params(w1b, b1b, w2b, b2b, compute_dtype=jnp.float32,
                                  weight_vmem_budget_bytes=1 << 18)
    assert p_stream.nf > 1, "expected forced multi-tile (streaming) configuration"
    y_stream = jax.block_until_ready(encoder_ffn_sublayer(x2, p_stream))
    assert jnp.allclose(y_stream, ref2, atol=1e-5, rtol=1e-5), "f32 streaming path mismatch"

    # 5) Streaming path with bf16 input/output (exercises the f32 scratch accumulator).
    x2_bf = x2.astype(jnp.bfloat16)
    ref2_bf = (x2_bf.astype(jnp.float32)
               + _ffn_reference(x2_bf.astype(jnp.float32), w1b, b1b, w2b, b2b))
    p_stream_bf = prepare_ffn_params(w1b, b1b, w2b, b2b, compute_dtype=jnp.bfloat16,
                                     weight_vmem_budget_bytes=1 << 18)
    assert p_stream_bf.nf > 1
    y_stream_bf = jax.block_until_ready(encoder_ffn_sublayer(x2_bf, p_stream_bf))
    assert y_stream_bf.dtype == jnp.bfloat16
    assert jnp.allclose(y_stream_bf.astype(jnp.float32), ref2_bf, atol=3e-2, rtol=3e-2), \
        "bf16 streaming path mismatch"

    print("KERNEL_OK")
</pallas_src>

<mosaic_0001>
module attributes {stable_mosaic.version = 11 : i64} {
  func.func @_ffn_kernel_single(%arg0: i32, %arg1: memref<128x128xf32, #tpu.memory_space<vmem>>, %arg2: memref<128x256xf32, #tpu.memory_space<vmem>>, %arg3: memref<1x256xf32, #tpu.memory_space<vmem>>, %arg4: memref<256x128xf32, #tpu.memory_space<vmem>>, %arg5: memref<1x128xf32, #tpu.memory_space<vmem>>, %arg6: memref<128x128xf32, #tpu.memory_space<vmem>>) attributes {dimension_semantics = [#tpu.dimension_semantics<parallel>], iteration_bounds = array<i64: 1>, scalar_prefetch = 0 : i64, scratch_operands = 0 : i64, tpu.core_type = #tpu.core_type<tc>, window_params = [{transform_indices = @transform_0, window_bounds = array<i64: 128, 128>}, {pipeline_mode = #tpu.pipeline_mode<synchronous>, transform_indices = @transform_1, window_bounds = array<i64: 128, 256>}, {pipeline_mode = #tpu.pipeline_mode<synchronous>, transform_indices = @transform_2, window_bounds = array<i64: 1, 256>}, {pipeline_mode = #tpu.pipeline_mode<synchronous>, transform_indices = @transform_3, window_bounds = array<i64: 256, 128>}, {pipeline_mode = #tpu.pipeline_mode<synchronous>, transform_indices = @transform_4, window_bounds = array<i64: 1, 128>}, {transform_indices = @transform_5, window_bounds = array<i64: 128, 128>}]} {
    %c0 = arith.constant 0 : index
    %c0_0 = arith.constant 0 : index
    %0 = vector.load %arg1[%c0, %c0_0] : memref<128x128xf32, #tpu.memory_space<vmem>>, vector<128x128xf32>
    %c0_1 = arith.constant 0 : index
    %c0_2 = arith.constant 0 : index
    %1 = vector.load %arg2[%c0_1, %c0_2] : memref<128x256xf32, #tpu.memory_space<vmem>>, vector<128x256xf32>
    %cst = arith.constant dense<0.000000e+00> : vector<128x256xf32>
    %2 = tpu.matmul %0, %1, %cst {dimension_numbers = #tpu.dot_dimension_numbers<[1], [0], [0], [1], [0, 0, 1, 1], [], []>} : vector<128x128xf32>, vector<128x256xf32>, vector<128x256xf32> -> vector<128x256xf32>
    %c0_3 = arith.constant 0 : index
    %c0_4 = arith.constant 0 : index
    %3 = vector.load %arg3[%c0_3, %c0_4] : memref<1x256xf32, #tpu.memory_space<vmem>>, vector<1x256xf32>
    %4 = vector.broadcast %3 : vector<1x256xf32> to vector<128x256xf32>
    %5 = arith.addf %2, %4 : vector<128x256xf32>
    %cst_5 = arith.constant 0.000000e+00 : f32
    %6 = vector.broadcast %cst_5 : f32 to vector<128x256xf32>
    %7 = arith.maximumf %5, %6 : vector<128x256xf32>
    %c0_6 = arith.constant 0 : index
    %c0_7 = arith.constant 0 : index
    %8 = vector.load %arg4[%c0_6, %c0_7] : memref<256x128xf32, #tpu.memory_space<vmem>>, vector<256x128xf32>
    %cst_8 = arith.constant dense<0.000000e+00> : vector<128x128xf32>
    %9 = tpu.matmul %7, %8, %cst_8 {dimension_numbers = #tpu.dot_dimension_numbers<[1], [0], [0], [1], [0, 0, 1, 1], [], []>} : vector<128x256xf32>, vector<256x128xf32>, vector<128x128xf32> -> vector<128x128xf32>
    %c0_9 = arith.constant 0 : index
    %c0_10 = arith.constant 0 : index
    %10 = vector.load %arg5[%c0_9, %c0_10] : memref<1x128xf32, #tpu.memory_space<vmem>>, vector<1x128xf32>
    %11 = vector.broadcast %10 : vector<1x128xf32> to vector<128x128xf32>
    %12 = arith.addf %9, %11 : vector<128x128xf32>
    %c0_11 = arith.constant 0 : index
    %c0_12 = arith.constant 0 : index
    %13 = vector.load %arg1[%c0_11, %c0_12] : memref<128x128xf32, #tpu.memory_space<vmem>>, vector<128x128xf32>
    %14 = arith.addf %12, %13 : vector<128x128xf32>
    %c0_13 = arith.constant 0 : index
    %c0_14 = arith.constant 0 : index
    %15 = vector.load %arg6[%c0_13, %c0_14] : memref<128x128xf32, #tpu.memory_space<vmem>>, vector<128x128xf32>
    tpu.vector_store %arg6[%c0_13, %c0_14], %14 {strides = array<i32>} : memref<128x128xf32, #tpu.memory_space<vmem>>, vector<128x128xf32>,
    return
  }
  func.func @transform_0(%arg0: i32) -> (i32, i32) {
    %c0_i32 = arith.constant 0 : i32
    %c0_i32_0 = arith.constant 0 : i32
    return %arg0, %c0_i32 : i32, i32
  }
  func.func @transform_1(%arg0: i32) -> (i32, i32) {
    %c0_i32 = arith.constant 0 : i32
    %c0_i32_0 = arith.constant 0 : i32
    %c0_i32_1 = arith.constant 0 : i32
    return %c0_i32, %c0_i32_0 : i32, i32
  }
  func.func @transform_2(%arg0: i32) -> (i32, i32) {
    %c0_i32 = arith.constant 0 : i32
    %c0_i32_0 = arith.constant 0 : i32
    %c0_i32_1 = arith.constant 0 : i32
    return %c0_i32, %c0_i32_0 : i32, i32
  }
  func.func @transform_3(%arg0: i32) -> (i32, i32) {
    %c0_i32 = arith.constant 0 : i32
    %c0_i32_0 = arith.constant 0 : i32
    %c0_i32_1 = arith.constant 0 : i32
    return %c0_i32, %c0_i32_0 : i32, i32
  }
  func.func @transform_4(%arg0: i32) -> (i32, i32) {
    %c0_i32 = arith.constant 0 : i32
    %c0_i32_0 = arith.constant 0 : i32
    %c0_i32_1 = arith.constant 0 : i32
    return %c0_i32, %c0_i32_0 : i32, i32
  }
  func.func @transform_5(%arg0: i32) -> (i32, i32) {
    %c0_i32 = arith.constant 0 : i32
    %c0_i32_0 = arith.constant 0 : i32
    return %arg0, %c0_i32 : i32, i32
  }
}

</mosaic_0001>

<bundles_post_ra>
// kernel: tpu_custom_call.1
= control target key start
LH: loop header
LB: loop body
LE: loop exit
PB: predicated region body
PF: predicated region fallthrough
CT: control target
= control target key end

     0   :  { %10 = vsyncpa [#allocation3], 0  ;;  %s925_s0 = inlined_call_operand.hbm [shape: f32[128,128], index: 0, kind: input, shape index: {}]   ;;  %s926_s1 = inlined_call_operand.hbm [shape: f32[128,256], index: 1, kind: input, shape index: {}]   ;;  %s927_s2 = inlined_call_operand.vmem [shape: f32[1,256], index: 2, kind: input, shape index: {}]   ;;  %s928_s3 = inlined_call_operand.hbm [shape: f32[256,128], index: 3, kind: input, shape index: {}]   ;;  %s929_s4 = inlined_call_operand.vmem [shape: f32[1,128], index: 4, kind: input, shape index: {}]   ;;  %s930_s5 = inlined_call_operand.hbm [shape: f32[128,128], index: 5, kind: output, shape index: {}]  }
   0x1   :  { %11 = vsyncpa [#allocation6], 0 }
   0x2   :  { %12 = vsyncpa [#allocation4], 0  ;;  %s725_s18 = smov [#allocation5]  }
   0x3   :  { %s30_s19 = sshll.u32 %s725_s18, 4  ;;  %s31_s19 = int_to_ptr.vmem [resolvable:$true] %s30_s19 }
   0x4   :  { %s647_s20 = scalar_lea.vmem %s31_s19, 4096  ;;  %p652_p1 = scmp.lt.s32.totalorder %s31_s19, %s31_s19 }
   0x5   :  { %p648_p0 = scmp.ne.s32.totalorder %s31_s19, %s647_s20  ;;  %p653_p2 = scmp.lt.s32.totalorder %s647_s20, %s647_s20 }
   0x7   :  { %p654_p3 = por %p653_p2, %p652_p1 }
   0x9   :  { %p655_p4 = pnand %p654_p3, %p648_p0 }
   0xb   :  { %658 = shalt.err (!%p655_p4)
}
   0xc   :  { %s726_s21 = smov 256   ;;  %s727_s22 = smov 16  }
   0xd   :  { %36 = dma.hbm_to_vmem [thread:$0]  %s926_s1, 4096, %s31_s19, [#allocation6], %s726_s21, %s726_s21, %s727_s22  }
   0xe   :  { %s728_s25 = smov [#allocation2]  }
   0xf   :  { %s18_s26 = sshll.u32 %s728_s25, 4  ;;  %s19_s26 = int_to_ptr.vmem [resolvable:$true] %s18_s26 }
  0x10   :  { %s667_s27 = scalar_lea.vmem %s19_s26, 2048  ;;  %p672_p6 = scmp.lt.s32.totalorder %s19_s26, %s19_s26 }
  0x11   :  { %p668_p5 = scmp.ne.s32.totalorder %s19_s26, %s667_s27  ;;  %p673_p7 = scmp.lt.s32.totalorder %s667_s27, %s667_s27 }
  0x13   :  { %p674_p8 = por %p673_p7, %p672_p6 }
  0x15   :  { %p675_p9 = pnand %p674_p8, %p668_p5 }
  0x17   :  { %678 = shalt.err (!%p675_p9)
}
  0x18   :  { %s729_s28 = smov 128   ;;  %s730_s29 = smov 8  }
  0x19   :  { %24 = dma.hbm_to_vmem [thread:$0]  %s925_s0, 2048, %s19_s26, [#allocation3], %s729_s28, %s729_s28, %s730_s29  }
  0x1a   :  { %s731_s1 = smov [#allocation7]  }
  0x1b   :  { %s44_s7 = sshll.u32 %s731_s1, 4  ;;  %s45_s7 = int_to_ptr.vmem [resolvable:$true] %s44_s7 }
  0x1c   :  { %s687_s8 = scalar_lea.vmem %s45_s7, 4096  ;;  %p692_p11 = scmp.lt.s32.totalorder %s45_s7, %s45_s7 }
  0x1d   :  { %p688_p10 = scmp.ne.s32.totalorder %s45_s7, %s687_s8  ;;  %p693_p12 = scmp.lt.s32.totalorder %s687_s8, %s687_s8 }
  0x1f   :  { %p694_p13 = por %p693_p12, %p692_p11 }
  0x21   :  { %p695_p0 = pnand %p694_p13, %p688_p10 }
  0x23   :  { %698 = shalt.err (!%p695_p0)
}
  0x24   :  { %50 = dma.hbm_to_vmem [thread:$0]  %s928_s3, 4096, %s45_s7, [#allocation6], %s729_s28, %s729_s28, %s730_s29  }
  0x25   :  { %719 = dma.done.wait [#allocation3], 2048  }
  0x26   :  { %720 = vsyncadd [#allocation3], 4294965248 }
  0x27   :  { %721 = dma.done.wait [#allocation6], 8192  }
  0x28   :  { %722 = vsyncadd [#allocation6], 4294959104  ;;  %v732_v0 = vmov 0.0   ;;  %v109_v1 = vld [vmem:[#allocation5 + $0xf8] sm:$0xff]  ;;  %v108_v2 = vld [vmem:[#allocation5 + $0xf0] sm:$0xff] }
  0x29   :  { %186 = vmatprep.mubr.f32.mxu0 %v732_v0  ;;  %v107_v3 = vld [vmem:[#allocation5 + $0xe8] sm:$0xff]  ;;  %122 = vmatprep.subr.mxu0 %v109_v1  ;;  %v106_v4 = vld [vmem:[#allocation5 + $0xe0] sm:$0xff]  ;;  %v105_v5 = vld [vmem:[#allocation5 + $0xd8] sm:$0xff] }
  0x2a   :  { %123 = vmatpush1.msra.mxu0 %v108_v2  ;;  %v104_v6 = vld [vmem:[#allocation5 + $0xd0] sm:$0xff]  ;;  %v103_v7 = vld [vmem:[#allocation5 + $0xc8] sm:$0xff]  ;;  %v102_v8 = vld [vmem:[#allocation5 + $0xc0] sm:$0xff] }
  0x2b   :  { %124 = vmatprep.subr.mxu0 %v107_v3  ;;  %v101_v9 = vld [vmem:[#allocation5 + $0xb8] sm:$0xff]  ;;  %v100_v10 = vld [vmem:[#allocation5 + $0xb0] sm:$0xff]  ;;  %v99_v11 = vld [vmem:[#allocation5 + $0xa8] sm:$0xff] }
  0x2c   :  { %125 = vmatpush1.msra.mxu0 %v106_v4  ;;  %v98_v12 = vld [vmem:[#allocation5 + $0xa0] sm:$0xff]  ;;  %v97_v13 = vld [vmem:[#allocation5 + $0x98] sm:$0xff]  ;;  %v96_v14 = vld [vmem:[#allocation5 + $0x90] sm:$0xff] }
  0x2d   :  { %126 = vmatprep.subr.mxu0 %v105_v5  ;;  %v95_v15 = vld [vmem:[#allocation5 + $0x88] sm:$0xff]  ;;  %v94_v16 = vld [vmem:[#allocation5 + $0x80] sm:$0xff]  ;;  %v93_v17 = vld [vmem:[#allocation5 + $0x78] sm:$0xff] }
  0x2e   :  { %127 = vmatpush1.msra.mxu0 %v104_v6  ;;  %v92_v18 = vld [vmem:[#allocation5 + $0x70] sm:$0xff]  ;;  %v91_v19 = vld [vmem:[#allocation5 + $0x68] sm:$0xff]  ;;  %v346_v20 = vld [vmem:[#allocation7 + $0xf8] sm:$0xff] }
  0x2f   :  { %128 = vmatprep.subr.mxu0 %v103_v7  ;;  %v330_v21 = vld [vmem:[#allocation7 + $0x78] sm:$0xff]  ;;  %v345_v22 = vld [vmem:[#allocation7 + $0xf0] sm:$0xff]  ;;  %v90_v23 = vld [vmem:[#allocation5 + $0x60] sm:$0xff]  ;;  %550 = vmatprep.subr.mxu1 %v346_v20 }
  0x30   :  { %129 = vmatpush1.msra.mxu0 %v102_v8  ;;  %v329_v24 = vld [vmem:[#allocation7 + $0x70] sm:$0xff]  ;;  %v89_v25 = vld [vmem:[#allocation5 + $0x58] sm:$0xff]  ;;  %551 = vmatpush3.msra.mxu1 %v330_v21  ;;  %v344_v26 = vld [vmem:[#allocation7 + $0xe8] sm:$0xff] }
  0x31   :  { %130 = vmatprep.subr.mxu0 %v101_v9  ;;  %v88_v27 = vld [vmem:[#allocation5 + $0x50] sm:$0xff]  ;;  %552 = vmatprep.subr.mxu1 %v345_v22  ;;  %v328_v28 = vld [vmem:[#allocation7 + $0x68] sm:$0xff]  ;;  %v343_v30 = vld [vmem:[#allocation7 + $0xe0] sm:$0xff] }
  0x32   :  { %131 = vmatpush1.msra.mxu0 %v100_v10  ;;  %v87_v29 = vld [vmem:[#allocation5 + $0x48] sm:$0xff]  ;;  %553 = vmatpush3.msra.mxu1 %v329_v24  ;;  %v86_v31 = vld [vmem:[#allocation5 + $0x40] sm:$0xff]  ;;  %v85_v33 = vld [vmem:[#allocation5 + $0x38] sm:$0xff] }
  0x33   :  { %132 = vmatprep.subr.mxu0 %v99_v11  ;;  %554 = vmatprep.subr.mxu1 %v344_v26  ;;  %v327_v32 = vld [vmem:[#allocation7 + $0x60] sm:$0xff]  ;;  %v342_v34 = vld [vmem:[#allocation7 + $0xd8] sm:$0xff]  ;;  %v84_v35 = vld [vmem:[#allocation5 + $0x30] sm:$0xff] }
  0x34   :  { %133 = vmatpush1.msra.mxu0 %v98_v12  ;;  %555 = vmatpush3.msra.mxu1 %v328_v28  ;;  %v326_v36 = vld [vmem:[#allocation7 + $0x58] sm:$0xff]  ;;  %v83_v37 = vld [vmem:[#allocation5 + $0x28] sm:$0xff]  ;;  %v341_v38 = vld [vmem:[#allocation7 + $0xd0] sm:$0xff] }
  0x35   :  { %134 = vmatprep.subr.mxu0 %v97_v13  ;;  %556 = vmatprep.subr.mxu1 %v343_v30  ;;  %v82_v39 = vld [vmem:[#allocation5 + $0x20] sm:$0xff]  ;;  %v325_v40 = vld [vmem:[#allocation7 + $0x50] sm:$0xff]  ;;  %v81_v41 = vld [vmem:[#allocation5 + $0x18] sm:$0xff] }
  0x36   :  { %135 = vmatpush1.msra.mxu0 %v96_v14  ;;  %557 = vmatpush3.msra.mxu1 %v327_v32  ;;  %v340_v42 = vld [vmem:[#allocation7 + $0xc8] sm:$0xff]  ;;  %v80_v43 = vld [vmem:[#allocation5 + $0x10] sm:$0xff]  ;;  %v339_v46 = vld [vmem:[#allocation7 + $0xc0] sm:$0xff] }
  0x37   :  { %136 = vmatprep.subr.mxu0 %v95_v15  ;;  %558 = vmatprep.subr.mxu1 %v342_v34  ;;  %v324_v44 = vld [vmem:[#allocation7 + $0x48] sm:$0xff]  ;;  %v78_v47 = vld [vmem:[#allocation5] sm:$0xff]  ;;  %v338_v50 = vld [vmem:[#allocation7 + $0xb8] sm:$0xff] }
  0x38   :  { %137 = vmatpush1.msra.mxu0 %v94_v16  ;;  %559 = vmatpush3.msra.mxu1 %v326_v36  ;;  %v79_v45 = vld [vmem:[#allocation5 + $0x8] sm:$0xff]  ;;  %v323_v48 = vld [vmem:[#allocation7 + $0x40] sm:$0xff]  ;;  %v322_v51 = vld [vmem:[#allocation7 + $0x38] sm:$0xff] }
  0x39   :  { %138 = vmatprep.subr.mxu0 %v93_v17  ;;  %560 = vmatprep.subr.mxu1 %v341_v38  ;;  %v780_v49 = vld [vmem:[#allocation2] sm:$0xff]  ;;  %v337_v52 = vld [vmem:[#allocation7 + $0xb0] sm:$0xff]  ;;  %v784_v54 = vld [vmem:[#allocation2 + $0x8] sm:$0xff] }
  0x3a   :  { %139 = vmatpush1.msra.mxu0 %v92_v18  ;;  %561 = vmatpush3.msra.mxu1 %v325_v40  ;;  %v321_v53 = vld [vmem:[#allocation7 + $0x30] sm:$0xff]  ;;  %v336_v55 = vld [vmem:[#allocation7 + $0xa8] sm:$0xff]  ;;  %v335_v57 = vld [vmem:[#allocation7 + $0xa0] sm:$0xff] }
  0x3b   :  { %140 = vmatprep.subr.mxu0 %v91_v19  ;;  %562 = vmatprep.subr.mxu1 %v340_v42  ;;  %v320_v56 = vld [vmem:[#allocation7 + $0x28] sm:$0xff]  ;;  %v319_v58 = vld [vmem:[#allocation7 + $0x20] sm:$0xff]  ;;  %v788_v59 = vld [vmem:[#allocation2 + $0x10] sm:$0xff] }
  0x3c   :  { %141 = vmatpush1.msra.mxu0 %v90_v23  ;;  %563 = vmatpush3.msra.mxu1 %v324_v44  ;;  %v792_v60 = vld [vmem:[#allocation2 + $0x18] sm:$0xff]  ;;  %v796_v61 = vld [vmem:[#allocation2 + $0x20] sm:$0xff]  ;;  %v800_v62 = vld [vmem:[#allocation2 + $0x28] sm:$0xff] }
  0x3d   :  { %142 = vmatprep.subr.mxu0 %v89_v25  ;;  %564 = vmatprep.subr.mxu1 %v339_v46  ;;  %v804_v63 = vld [vmem:[#allocation2 + $0x30] sm:$0xff]  ;;  %v808_v1 = vld [vmem:[#allocation2 + $0x38] sm:$0xff]  ;;  %v812_v2 = vld [vmem:[#allocation2 + $0x40] sm:$0xff] }
  0x3e   :  { %143 = vmatpush1.msra.mxu0 %v88_v27  ;;  %565 = vmatpush3.msra.mxu1 %v323_v48  ;;  %v816_v3 = vld [vmem:[#allocation2 + $0x48] sm:$0xff]  ;;  %v820_v4 = vld [vmem:[#allocation2 + $0x50] sm:$0xff]  ;;  %v824_v5 = vld [vmem:[#allocation2 + $0x58] sm:$0xff] }
  0x3f   :  { %144 = vmatprep.subr.mxu0 %v87_v29  ;;  %566 = vmatprep.subr.mxu1 %v338_v50  ;;  %v828_v6 = vld [vmem:[#allocation2 + $0x60] sm:$0xff]  ;;  %v832_v7 = vld [vmem:[#allocation2 + $0x68] sm:$0xff]  ;;  %v836_v8 = vld [vmem:[#allocation2 + $0x70] sm:$0xff] }
  0x40   :  { %145 = vmatpush1.msra.mxu0 %v86_v31  ;;  %567 = vmatpush3.msra.mxu1 %v322_v51  ;;  %v840_v9 = vld [vmem:[#allocation2 + $0x78] sm:$0xff]  ;;  %v333_v12 = vld [vmem:[#allocation7 + $0x90] sm:$0xff]  ;;  %v332_v14 = vld [vmem:[#allocation7 + $0x88] sm:$0xff] }
  0x41   :  { %146 = vmatprep.subr.mxu0 %v85_v33  ;;  %568 = vmatprep.subr.mxu1 %v337_v52  ;;  %v334_v10 = vld [vmem:[#allocation7 + $0x98] sm:$0xff]  ;;  %v317_v13 = vld [vmem:[#allocation7 + $0x10] sm:$0xff]  ;;  %v316_v15 = vld [vmem:[#allocation7 + $0x8] sm:$0xff] }
  0x42   :  { %147 = vmatpush1.msra.mxu0 %v84_v35  ;;  %569 = vmatpush3.msra.mxu1 %v321_v53  ;;  %v318_v11 = vld [vmem:[#allocation7 + $0x18] sm:$0xff]  ;;  %v331_v16 = vld [vmem:[#allocation7 + $0x80] sm:$0xff] }
  0x43   :  { %148 = vmatprep.subr.mxu0 %v83_v37  ;;  %570 = vmatprep.subr.mxu1 %v336_v55  ;;  %v315_v17 = vld [vmem:[#allocation7] sm:$0xff] }
  0x44   :  { %149 = vmatpush1.msra.mxu0 %v82_v39  ;;  %571 = vmatpush3.msra.mxu1 %v320_v56  ;;  %v110_v20 = vld [vmem:[%s927_s2] sm:$0x3] }
  0x45   :  { %150 = vmatprep.subr.mxu0 %v81_v41  ;;  %572 = vmatprep.subr.mxu1 %v335_v57 }
  0x46   :  { %151 = vmatpush1.msra.mxu0 %v80_v43  ;;  %573 = vmatpush3.msra.mxu1 %v319_v58 }
  0x47   :  { %152 = vmatprep.subr.mxu0 %v79_v45  ;;  %574 = vmatprep.subr.mxu1 %v334_v10 }
  0x48   :  { %153 = vmatpush1.msra.mxu0 %v78_v47  ;;  %575 = vmatpush3.msra.mxu1 %v318_v11 }
  0x49   :  { %187 = vmatmul.mubr.f32.vlgmr.msra.gmra.mxu0 %v780_v49  ;;  %576 = vmatprep.subr.mxu1 %v333_v12 }
  0x4a   :  { %192 = vmatprep.mubr.f32.mxu0 %v732_v0  ;;  %577 = vmatpush3.msra.mxu1 %v317_v13 }
  0x4b   :  { %578 = vmatprep.subr.mxu1 %v332_v14 }
  0x4c   :  { %579 = vmatpush3.msra.mxu1 %v316_v15 }
  0x4d   :  { %193 = vmatmul.mubr.f32.gmra.mxu0 %v784_v54  ;;  %580 = vmatprep.subr.mxu1 %v331_v16 }
  0x4e   :  { %198 = vmatprep.mubr.f32.mxu0 %v732_v0  ;;  %581 = vmatpush3.msra.mxu1 %v315_v17 }
  0x51   :  { %199 = vmatmul.mubr.f32.gmra.mxu0 %v788_v59 }
  0x52   :  { %204 = vmatprep.mubr.f32.mxu0 %v732_v0 }
  0x55   :  { %205 = vmatmul.mubr.f32.gmra.mxu0 %v792_v60 }
  0x56   :  { %210 = vmatprep.mubr.f32.mxu0 %v732_v0 }
  0x59   :  { %211 = vmatmul.mubr.f32.gmra.mxu0 %v796_v61 }
  0x5a   :  { %216 = vmatprep.mubr.f32.mxu0 %v732_v0 }
  0x5d   :  { %217 = vmatmul.mubr.f32.gmra.mxu0 %v800_v62 }
  0x5e   :  { %222 = vmatprep.mubr.f32.mxu0 %v732_v0 }
  0x61   :  { %223 = vmatmul.mubr.f32.gmra.mxu0 %v804_v63 }
  0x62   :  { %228 = vmatprep.mubr.f32.mxu0 %v732_v0 }
  0x65   :  { %229 = vmatmul.mubr.f32.gmra.mxu0 %v808_v1 }
  0x66   :  { %234 = vmatprep.mubr.f32.mxu0 %v732_v0 }
  0x69   :  { %235 = vmatmul.mubr.f32.gmra.mxu0 %v812_v2 }
  0x6a   :  { %240 = vmatprep.mubr.f32.mxu0 %v732_v0 }
  0x6d   :  { %241 = vmatmul.mubr.f32.gmra.mxu0 %v816_v3 }
  0x6e   :  { %246 = vmatprep.mubr.f32.mxu0 %v732_v0 }
  0x71   :  { %247 = vmatmul.mubr.f32.gmra.mxu0 %v820_v4 }
  0x72   :  { %252 = vmatprep.mubr.f32.mxu0 %v732_v0 }
  0x75   :  { %253 = vmatmul.mubr.f32.gmra.mxu0 %v824_v5 }
  0x76   :  { %258 = vmatprep.mubr.f32.mxu0 %v732_v0 }
  0x79   :  { %259 = vmatmul.mubr.f32.gmra.mxu0 %v828_v6 }
  0x7a   :  { %264 = vmatprep.mubr.f32.mxu0 %v732_v0 }
  0x7d   :  { %265 = vmatmul.mubr.f32.gmra.mxu0 %v832_v7 }
  0x7e   :  { %270 = vmatprep.mubr.f32.mxu0 %v732_v0 }
  0x81   :  { %271 = vmatmul.mubr.f32.gmra.mxu0 %v836_v8 }
  0x82   :  { %276 = vmatprep.mubr.f32.mxu0 %v732_v0  ;;  %v112_v0 = vlaneseq }
  0x84   :  { %v113_v18 = vshrl.u32 %v112_v0, 7 }
  0x85   :  { %277 = vmatmul.mubr.f32.gmra.mxu0 %v840_v9 }
  0x86   :  { %v114_v19 = vsub.s32 0, %v113_v18  ;;  %v118_v21 = vsub.s32 1, %v113_v18 }
  0x88   :  { %v846_v22 = vrot.slane %v110_v20, %v114_v19  ;;  %v848_v23 = vrot.slane %v110_v20, %v118_v21 }
 0x109   :  { %v188_v24 = vpop.f32.mrf.mxu0 }
 0x10a   :  { %v189_v25 = vadd.f32 %v188_v24, %v846_v22 }
 0x10b   :  { %v190_v26 = vpop.f32.mrf.mxu0 }
 0x10c   :  { %v191_v27 = vadd.f32 %v190_v26, %v848_v23  ;;  %v283_v30 = vmax.f32 %v189_v25, 0.0 }
 0x10d   :  { %v194_v28 = vpop.f32.mrf.mxu0 }
 0x10e   :  { %v284_v29 = vmax.f32 %v191_v27, 0.0  ;;  %v195_v31 = vadd.f32 %v194_v28, %v846_v22 }
 0x10f   :  { %v196_v32 = vpop.f32.mrf.mxu0 }
 0x110   :  { %v197_v33 = vadd.f32 %v196_v32, %v848_v23  ;;  %418 = vmatprep.mubr.f32.mxu1 %v284_v29  ;;  %v285_v36 = vmax.f32 %v195_v31, 0.0 }
 0x111   :  { %v200_v34 = vpop.f32.mrf.mxu0  ;;  %419 = vmatmul.mubr.f32.vlgmr.msra.gmra.mxu1 %v283_v30 }
 0x112   :  { %v286_v35 = vmax.f32 %v197_v33, 0.0  ;;  %v201_v37 = vadd.f32 %v200_v34, %v846_v22 }
 0x113   :  { %v202_v38 = vpop.f32.mrf.mxu0 }
 0x114   :  { %v203_v39 = vadd.f32 %v202_v38, %v848_v23  ;;  %423 = vmatprep.mubr.f32.mxu1 %v286_v35  ;;  %v287_v42 = vmax.f32 %v201_v37, 0.0 }
 0x115   :  { %v206_v40 = vpop.f32.mrf.mxu0  ;;  %424 = vmatmul.mubr.f32.gmra.mxu1 %v285_v36 }
 0x116   :  { %v288_v41 = vmax.f32 %v203_v39, 0.0  ;;  %v207_v43 = vadd.f32 %v206_v40, %v846_v22 }
 0x117   :  { %v208_v44 = vpop.f32.mrf.mxu0 }
 0x118   :  { %v209_v45 = vadd.f32 %v208_v44, %v848_v23  ;;  %428 = vmatprep.mubr.f32.mxu1 %v288_v41  ;;  %v289_v48 = vmax.f32 %v207_v43, 0.0 }
 0x119   :  { %v212_v46 = vpop.f32.mrf.mxu0  ;;  %429 = vmatmul.mubr.f32.gmra.mxu1 %v287_v42 }
 0x11a   :  { %v290_v47 = vmax.f32 %v209_v45, 0.0  ;;  %v213_v50 = vadd.f32 %v212_v46, %v846_v22 }
 0x11b   :  { %v214_v51 = vpop.f32.mrf.mxu0 }
 0x11c   :  { %v215_v52 = vadd.f32 %v214_v51, %v848_v23  ;;  %433 = vmatprep.mubr.f32.mxu1 %v290_v47  ;;  %v291_v56 = vmax.f32 %v213_v50, 0.0 }
 0x11d   :  { %v218_v53 = vpop.f32.mrf.mxu0  ;;  %434 = vmatmul.mubr.f32.gmra.mxu1 %v289_v48 }
 0x11e   :  { %v292_v55 = vmax.f32 %v215_v52, 0.0  ;;  %v219_v57 = vadd.f32 %v218_v53, %v846_v22 }
 0x11f   :  { %v220_v58 = vpop.f32.mrf.mxu0 }
 0x120   :  { %v221_v10 = vadd.f32 %v220_v58, %v848_v23  ;;  %438 = vmatprep.mubr.f32.mxu1 %v292_v55  ;;  %v293_v13 = vmax.f32 %v219_v57, 0.0 }
 0x121   :  { %v224_v11 = vpop.f32.mrf.mxu0  ;;  %439 = vmatmul.mubr.f32.gmra.mxu1 %v291_v56 }
 0x122   :  { %v294_v12 = vmax.f32 %v221_v10, 0.0  ;;  %v225_v14 = vadd.f32 %v224_v11, %v846_v22 }
 0x123   :  { %v226_v15 = vpop.f32.mrf.mxu0 }
 0x124   :  { %v227_v16 = vadd.f32 %v226_v15, %v848_v23  ;;  %443 = vmatprep.mubr.f32.mxu1 %v294_v12  ;;  %v295_v18 = vmax.f32 %v225_v14, 0.0 }
 0x125   :  { %v230_v17 = vpop.f32.mrf.mxu0  ;;  %444 = vmatmul.mubr.f32.gmra.mxu1 %v293_v13 }
 0x126   :  { %v296_v0 = vmax.f32 %v227_v16, 0.0  ;;  %v231_v19 = vadd.f32 %v230_v17, %v846_v22 }
 0x127   :  { %v232_v20 = vpop.f32.mrf.mxu0 }
 0x128   :  { %v233_v21 = vadd.f32 %v232_v20, %v848_v23  ;;  %448 = vmatprep.mubr.f32.mxu1 %v296_v0  ;;  %v297_v26 = vmax.f32 %v231_v19, 0.0 }
 0x129   :  { %v236_v24 = vpop.f32.mrf.mxu0  ;;  %449 = vmatmul.mubr.f32.gmra.mxu1 %v295_v18 }
 0x12a   :  { %v298_v25 = vmax.f32 %v233_v21, 0.0  ;;  %v237_v27 = vadd.f32 %v236_v24, %v846_v22 }
 0x12b   :  { %v238_v28 = vpop.f32.mrf.mxu0 }
 0x12c   :  { %v239_v29 = vadd.f32 %v238_v28, %v848_v23  ;;  %453 = vmatprep.mubr.f32.mxu1 %v298_v25  ;;  %v299_v32 = vmax.f32 %v237_v27, 0.0 }
 0x12d   :  { %v242_v30 = vpop.f32.mrf.mxu0  ;;  %454 = vmatmul.mubr.f32.gmra.mxu1 %v297_v26 }
 0x12e   :  { %v300_v31 = vmax.f32 %v239_v29, 0.0  ;;  %v243_v33 = vadd.f32 %v242_v30, %v846_v22  ;;  %v885_v29 = vld [vmem:[%s929_s4] ss:$0 sm:$0xff]  ;;  %s733_s4 = smov [#allocation8]  }
 0x12f   :  { %v244_v34 = vpop.f32.mrf.mxu0  ;;  %s536_s12 = sshll.u32 %s733_s4, 4  ;;  %s537_s12 = int_to_ptr.vmem [resolvable:$true] %s536_s12 }
 0x130   :  { %v245_v35 = vadd.f32 %v244_v34, %v848_v23  ;;  %458 = vmatprep.mubr.f32.mxu1 %v300_v31  ;;  %v301_v38 = vmax.f32 %v243_v33, 0.0  ;;  %s699_s13 = scalar_lea.vmem %s537_s12, 2048  ;;  %p704_p2 = scmp.lt.s32.totalorder %s537_s12, %s537_s12 }
 0x131   :  { %v248_v36 = vpop.f32.mrf.mxu0  ;;  %459 = vmatmul.mubr.f32.gmra.mxu1 %v299_v32  ;;  %p700_p1 = scmp.ne.s32.totalorder %s537_s12, %s699_s13  ;;  %p705_p3 = scmp.lt.s32.totalorder %s699_s13, %s699_s13 }
 0x132   :  { %v302_v37 = vmax.f32 %v245_v35, 0.0  ;;  %v249_v39 = vadd.f32 %v248_v36, %v846_v22 }
 0x133   :  { %v250_v40 = vpop.f32.mrf.mxu0  ;;  %p706_p4 = por %p705_p3, %p704_p2 }
 0x134   :  { %v251_v41 = vadd.f32 %v250_v40, %v848_v23  ;;  %463 = vmatprep.mubr.f32.mxu1 %v302_v37  ;;  %v303_v44 = vmax.f32 %v249_v39, 0.0 }
 0x135   :  { %v254_v42 = vpop.f32.mrf.mxu0  ;;  %464 = vmatmul.mubr.f32.gmra.mxu1 %v301_v38  ;;  %p707_p5 = pnand %p706_p4, %p700_p1 }
 0x136   :  { %v304_v43 = vmax.f32 %v251_v41, 0.0  ;;  %v255_v45 = vadd.f32 %v254_v42, %v846_v22 }
 0x137   :  { %v256_v46 = vpop.f32.mrf.mxu0 }
 0x138   :  { %v257_v47 = vadd.f32 %v256_v46, %v848_v23  ;;  %468 = vmatprep.mubr.f32.mxu1 %v304_v43  ;;  %v305_v51 = vmax.f32 %v255_v45, 0.0 }
 0x139   :  { %v260_v48 = vpop.f32.mrf.mxu0  ;;  %469 = vmatmul.mubr.f32.gmra.mxu1 %v303_v44 }
 0x13a   :  { %v306_v50 = vmax.f32 %v257_v47, 0.0  ;;  %v261_v52 = vadd.f32 %v260_v48, %v846_v22 }
 0x13b   :  { %v262_v53 = vpop.f32.mrf.mxu0 }
 0x13c   :  { %v263_v55 = vadd.f32 %v262_v53, %v848_v23  ;;  %473 = vmatprep.mubr.f32.mxu1 %v306_v50  ;;  %v307_v58 = vmax.f32 %v261_v52, 0.0 }
 0x13d   :  { %v266_v56 = vpop.f32.mrf.mxu0  ;;  %474 = vmatmul.mubr.f32.gmra.mxu1 %v305_v51 }
 0x13e   :  { %v308_v57 = vmax.f32 %v263_v55, 0.0  ;;  %v267_v10 = vadd.f32 %v266_v56, %v846_v22 }
 0x13f   :  { %v268_v11 = vpop.f32.mrf.mxu0 }
 0x140   :  { %v269_v12 = vadd.f32 %v268_v11, %v848_v23  ;;  %478 = vmatprep.mubr.f32.mxu1 %v308_v57  ;;  %v309_v15 = vmax.f32 %v267_v10, 0.0 }
 0x141   :  { %v272_v13 = vpop.f32.mrf.mxu0  ;;  %479 = vmatmul.mubr.f32.gmra.mxu1 %v307_v58 }
 0x142   :  { %v310_v14 = vmax.f32 %v269_v12, 0.0  ;;  %v273_v16 = vadd.f32 %v272_v13, %v846_v22 }
 0x143   :  { %v274_v17 = vpop.f32.mrf.mxu0 }
 0x144   :  { %v275_v0 = vadd.f32 %v274_v17, %v848_v23  ;;  %483 = vmatprep.mubr.f32.mxu1 %v310_v14  ;;  %v311_v20 = vmax.f32 %v273_v16, 0.0 }
 0x145   :  { %v278_v18 = vpop.f32.mrf.mxu0  ;;  %484 = vmatmul.mubr.f32.gmra.mxu1 %v309_v15 }
 0x146   :  { %v312_v19 = vmax.f32 %v275_v0, 0.0  ;;  %v279_v21 = vadd.f32 %v278_v18, %v846_v22 }
 0x147   :  { %v280_v24 = vpop.f32.mrf.mxu0 }
 0x148   :  { %v281_v25 = vadd.f32 %v280_v24, %v848_v23  ;;  %488 = vmatprep.mubr.f32.mxu1 %v312_v19  ;;  %v313_v27 = vmax.f32 %v279_v21, 0.0 }
 0x149   :  { %489 = vmatmul.mubr.f32.gmra.mxu1 %v311_v20 }
 0x14a   :  { %v314_v26 = vmax.f32 %v281_v25, 0.0 }
 0x14c   :  { %493 = vmatprep.mubr.f32.mxu1 %v314_v26 }
 0x14d   :  { %494 = vmatmul.mubr.f32.gmra.mxu1 %v313_v27 }
 0x1d1   :  { %v582_v28 = vpop.f32.mrf.mxu1 }
 0x1d3   :  { %v583_v30 = vpop.f32.mrf.mxu1 }
 0x1d4   :  { %v584_v31 = vadd.f32 %v583_v30, %v582_v28 }
 0x1d5   :  { %v585_v32 = vpop.f32.mrf.mxu1 }
 0x1d6   :  { %v421_v22 = vadd.f32 %v584_v31, %v885_v29 }
 0x1d7   :  { %v586_v33 = vpop.f32.mrf.mxu1 }
 0x1d8   :  { %v499_v23 = vadd.f32 %v421_v22, %v780_v49  ;;  %v587_v34 = vadd.f32 %v586_v33, %v585_v32 }
 0x1d9   :  { %v588_v35 = vpop.f32.mrf.mxu1 }
 0x1da   :  { %515 = vst [vmem:[#allocation8] sm:$0xff] %v499_v23  ;;  %v426_v36 = vadd.f32 %v587_v34, %v885_v29 }
 0x1db   :  { %v589_v37 = vpop.f32.mrf.mxu1 }
 0x1dc   :  { %v500_v38 = vadd.f32 %v426_v36, %v784_v54  ;;  %v590_v39 = vadd.f32 %v589_v37, %v588_v35 }
 0x1dd   :  { %v591_v40 = vpop.f32.mrf.mxu1 }
 0x1de   :  { %516 = vst [vmem:[#allocation8 + $0x8] sm:$0xff] %v500_v38  ;;  %v431_v41 = vadd.f32 %v590_v39, %v885_v29 }
 0x1df   :  { %v592_v42 = vpop.f32.mrf.mxu1 }
 0x1e0   :  { %v501_v43 = vadd.f32 %v431_v41, %v788_v59  ;;  %v593_v44 = vadd.f32 %v592_v42, %v591_v40 }
 0x1e1   :  { %v594_v45 = vpop.f32.mrf.mxu1 }
 0x1e2   :  { %517 = vst [vmem:[#allocation8 + $0x10] sm:$0xff] %v501_v43  ;;  %v436_v49 = vadd.f32 %v593_v44, %v885_v29 }
 0x1e3   :  { %v595_v46 = vpop.f32.mrf.mxu1 }
 0x1e4   :  { %v502_v47 = vadd.f32 %v436_v49, %v792_v60  ;;  %v596_v48 = vadd.f32 %v595_v46, %v594_v45 }
 0x1e5   :  { %v597_v50 = vpop.f32.mrf.mxu1 }
 0x1e6   :  { %518 = vst [vmem:[#allocation8 + $0x18] sm:$0xff] %v502_v47  ;;  %v441_v54 = vadd.f32 %v596_v48, %v885_v29 }
 0x1e7   :  { %v598_v51 = vpop.f32.mrf.mxu1 }
 0x1e8   :  { %v503_v52 = vadd.f32 %v441_v54, %v796_v61  ;;  %v599_v53 = vadd.f32 %v598_v51, %v597_v50 }
 0x1e9   :  { %v600_v55 = vpop.f32.mrf.mxu1 }
 0x1ea   :  { %519 = vst [vmem:[#allocation8 + $0x20] sm:$0xff] %v503_v52  ;;  %v446_v59 = vadd.f32 %v599_v53, %v885_v29 }
 0x1eb   :  { %v601_v56 = vpop.f32.mrf.mxu1 }
 0x1ec   :  { %v504_v57 = vadd.f32 %v446_v59, %v800_v62  ;;  %v602_v58 = vadd.f32 %v601_v56, %v600_v55 }
 0x1ed   :  { %v603_v10 = vpop.f32.mrf.mxu1 }
 0x1ee   :  { %520 = vst [vmem:[#allocation8 + $0x28] sm:$0xff] %v504_v57  ;;  %v451_v60 = vadd.f32 %v602_v58, %v885_v29 }
 0x1ef   :  { %v604_v11 = vpop.f32.mrf.mxu1 }
 0x1f0   :  { %v505_v12 = vadd.f32 %v451_v60, %v804_v63  ;;  %v605_v13 = vadd.f32 %v604_v11, %v603_v10 }
 0x1f1   :  { %v606_v14 = vpop.f32.mrf.mxu1 }
 0x1f2   :  { %521 = vst [vmem:[#allocation8 + $0x30] sm:$0xff] %v505_v12  ;;  %v456_v61 = vadd.f32 %v605_v13, %v885_v29 }
 0x1f3   :  { %v607_v15 = vpop.f32.mrf.mxu1 }
 0x1f4   :  { %v506_v16 = vadd.f32 %v456_v61, %v808_v1  ;;  %v608_v17 = vadd.f32 %v607_v15, %v606_v14 }
 0x1f5   :  { %v609_v0 = vpop.f32.mrf.mxu1 }
 0x1f6   :  { %522 = vst [vmem:[#allocation8 + $0x38] sm:$0xff] %v506_v16  ;;  %v461_v62 = vadd.f32 %v608_v17, %v885_v29 }
 0x1f7   :  { %v610_v18 = vpop.f32.mrf.mxu1 }
 0x1f8   :  { %v507_v19 = vadd.f32 %v461_v62, %v812_v2  ;;  %v611_v20 = vadd.f32 %v610_v18, %v609_v0 }
 0x1f9   :  { %v612_v21 = vpop.f32.mrf.mxu1 }
 0x1fa   :  { %523 = vst [vmem:[#allocation8 + $0x40] sm:$0xff] %v507_v19  ;;  %v466_v63 = vadd.f32 %v611_v20, %v885_v29 }
 0x1fb   :  { %v613_v24 = vpop.f32.mrf.mxu1 }
 0x1fc   :  { %v508_v25 = vadd.f32 %v466_v63, %v816_v3  ;;  %v614_v26 = vadd.f32 %v613_v24, %v612_v21 }
 0x1fd   :  { %v615_v27 = vpop.f32.mrf.mxu1 }
 0x1fe   :  { %524 = vst [vmem:[#allocation8 + $0x48] sm:$0xff] %v508_v25  ;;  %v471_v1 = vadd.f32 %v614_v26, %v885_v29 }
 0x1ff   :  { %v616_v28 = vpop.f32.mrf.mxu1 }
 0x200   :  { %v509_v30 = vadd.f32 %v471_v1, %v820_v4  ;;  %v617_v31 = vadd.f32 %v616_v28, %v615_v27 }
 0x201   :  { %v618_v32 = vpop.f32.mrf.mxu1 }
 0x202   :  { %525 = vst [vmem:[#allocation8 + $0x50] sm:$0xff] %v509_v30  ;;  %v476_v2 = vadd.f32 %v617_v31, %v885_v29 }
 0x203   :  { %v619_v22 = vpop.f32.mrf.mxu1 }
 0x204   :  { %v510_v33 = vadd.f32 %v476_v2, %v824_v5  ;;  %v620_v23 = vadd.f32 %v619_v22, %v618_v32 }
 0x205   :  { %v621_v34 = vpop.f32.mrf.mxu1 }
 0x206   :  { %526 = vst [vmem:[#allocation8 + $0x58] sm:$0xff] %v510_v33  ;;  %v481_v3 = vadd.f32 %v620_v23, %v885_v29 }
 0x207   :  { %v622_v35 = vpop.f32.mrf.mxu1 }
 0x208   :  { %v511_v36 = vadd.f32 %v481_v3, %v828_v6  ;;  %v623_v37 = vadd.f32 %v622_v35, %v621_v34 }
 0x209   :  { %v624_v38 = vpop.f32.mrf.mxu1 }
 0x20a   :  { %527 = vst [vmem:[#allocation8 + $0x60] sm:$0xff] %v511_v36  ;;  %v486_v4 = vadd.f32 %v623_v37, %v885_v29 }
 0x20b   :  { %v625_v39 = vpop.f32.mrf.mxu1 }
 0x20c   :  { %v512_v40 = vadd.f32 %v486_v4, %v832_v7  ;;  %v626_v41 = vadd.f32 %v625_v39, %v624_v38 }
 0x20d   :  { %v627_v42 = vpop.f32.mrf.mxu1 }
 0x20e   :  { %528 = vst [vmem:[#allocation8 + $0x68] sm:$0xff] %v512_v40  ;;  %v491_v5 = vadd.f32 %v626_v41, %v885_v29 }
 0x20f   :  { %v628_v43 = vpop.f32.mrf.mxu1 }
 0x210   :  { %v513_v44 = vadd.f32 %v491_v5, %v836_v8  ;;  %v629_v45 = vadd.f32 %v628_v43, %v627_v42 }
 0x212   :  { %529 = vst [vmem:[#allocation8 + $0x70] sm:$0xff] %v513_v44  ;;  %v496_v6 = vadd.f32 %v629_v45, %v885_v29 }
 0x214   :  { %v514_v49 = vadd.f32 %v496_v6, %v840_v9 }
 0x216   :  { %530 = vst [vmem:[#allocation8 + $0x78] sm:$0xff] %v514_v49 }
 0x217   :  { %710 = shalt.err (!%p707_p5)
}
 0x218   :  { %542 = dma.vmem_to_hbm [thread:$0]  %s537_s12, 2048, %s930_s5, [#allocation4], %s729_s28, %s729_s28, %s730_s29  }
 0x219   :  { %723 = dma.done.wait [#allocation4], 2048  }
 0x21a   :  { %724 = vsyncadd [#allocation4], 4294965248 }
 0x21b   :  { %546 = vsyncpa [#allocation3], 1 }
 0x21c   :  { %547 = vsyncpa [#allocation6], 1 }
 0x21d   :  { %548 = vsyncpa [#allocation4], 1 }

</bundles_post_ra>
